<compile_context>
chip_gen: v7x
topology: tpu7x:2x2x1
jax: 0.10.0
libtpu: 0.0.40
codegen_flags: <defaults>
</compile_context>

<pallas_src>
import functools

import jax
import jax.numpy as jnp
from jax.experimental import pallas as pl
from jax.experimental.pallas import tpu as pltpu


# ---------------------------------------------------------------------------
# Pass 1: spatial sum (accumulated over HW tiles) -> (B, C, 1) f32
# ---------------------------------------------------------------------------
def _pool_sum_kernel(x_ref, o_ref):
    # x_ref: (1, C, T), o_ref: (1, C, 1) f32, resident across the t axis.
    @pl.when(pl.program_id(1) == 0)
    def _():
        o_ref[...] = jnp.zeros_like(o_ref)

    xf = x_ref[0].astype(jnp.float32)                     # (C, T)
    o_ref[0] += jnp.sum(xf, axis=-1, keepdims=True)       # (C, 1)


# ---------------------------------------------------------------------------
# SE step: one batched matmul chain on the pooled means.
#   s = sigmoid(relu(mean @ w1^T + b1) @ w2^T + b2), weights pre-transposed.
# ---------------------------------------------------------------------------
def _se_kernel(y_ref, w1t_ref, b1_ref, w2t_ref, b2_ref, s_ref, *, inv_hw):
    y = y_ref[...] * inv_hw                                # (B, C) f32 mean
    h = jnp.dot(y, w1t_ref[...], preferred_element_type=jnp.float32)
    h = jnp.maximum(h + b1_ref[...], 0.0)                  # (B, Cmid)
    s = jnp.dot(h, w2t_ref[...], preferred_element_type=jnp.float32)
    s = jax.nn.sigmoid(s + b2_ref[...])                    # (B, C)
    s_ref[...] = s.astype(s_ref.dtype)                     # cast to x dtype


# ---------------------------------------------------------------------------
# Pass 2: scale the input by the per-channel attention (native dtype).
# ---------------------------------------------------------------------------
def _scale_kernel(x_ref, s_ref, o_ref):
    # x_ref: (1, C, T), s_ref: (1, C, 1) in x dtype, o_ref: (1, C, T)
    o_ref[0] = (x_ref[0] * s_ref[0]).astype(o_ref.dtype)


def _pick_hw_tile(hw, c, itemsize):
    """Largest HW tile that (a) divides HW, (b) is lane-dense (mult of 128
    when possible), (c) keeps ~4 double-buffered (C, T) blocks under ~12 MiB
    so all TPU generations' scoped-VMEM defaults are respected."""
    budget_bytes = 12 * 1024 * 1024
    cap = max(128, budget_bytes // (4 * itemsize * max(c, 1)))
    if hw <= cap:
        return hw
    t = (cap // 128) * 128
    while t >= 128:
        if hw % t == 0:
            return t
        t -= 128
    # TODO(synk): HW with no 128-multiple divisor under the VMEM cap falls
    # back to a full-extent block; may need vmem_limit_bytes for huge images.
    return hw


def ca_layer(x, w1, b1, w2, b2):
    """x: (B, C, H, W). w1: (Cmid, C), b1: (Cmid,), w2: (C, Cmid), b2: (C,)."""
    B, C, H, W = x.shape
    HW = H * W
    Cmid = w1.shape[0]
    assert w1.shape == (Cmid, C) and w2.shape == (C, Cmid)

    itemsize = jnp.dtype(x.dtype).itemsize
    T = _pick_hw_tile(HW, C, itemsize)
    nt = HW // T

    x_flat = x.reshape(B, C, HW)

    # ---- Pass 1: pooled spatial sums --------------------------------------
    pooled = pl.pallas_call(
        _pool_sum_kernel,
        out_shape=jax.ShapeDtypeStruct((B, C, 1), jnp.float32),
        grid_spec=pltpu.PrefetchScalarGridSpec(
            num_scalar_prefetch=0,
            grid=(B, nt),
            in_specs=[pl.BlockSpec((1, C, T), lambda b, t: (b, 0, t))],
            out_specs=pl.BlockSpec((1, C, 1), lambda b, t: (b, 0, 0)),
        ),
        compiler_params=pltpu.CompilerParams(
            dimension_semantics=("parallel", "arbitrary")),
        cost_estimate=pl.CostEstimate(
            flops=int(B * C * HW),
            transcendentals=0,
            bytes_accessed=int(B * C * HW * itemsize + B * C * 4)),
    )(x_flat)

    # ---- SE step: one tiny batched matmul chain ----------------------------
    w1t = jnp.transpose(w1)          # (C, Cmid)  pre-transposed once
    w2t = jnp.transpose(w2)          # (Cmid, C)
    b1_2d = b1.reshape(1, Cmid)
    b2_2d = b2.reshape(1, C)
    pooled_2d = pooled.reshape(B, C)

    se_fn = functools.partial(_se_kernel, inv_hw=1.0 / float(HW))
    s = pl.pallas_call(
        se_fn,
        out_shape=jax.ShapeDtypeStruct((B, C), x.dtype),
        grid_spec=pltpu.PrefetchScalarGridSpec(
            num_scalar_prefetch=0,
            grid=(1,),
            in_specs=[
                pl.BlockSpec((B, C), lambda i: (0, 0)),       # pooled sums
                pl.BlockSpec((C, Cmid), lambda i: (0, 0)),    # w1^T
                pl.BlockSpec((1, Cmid), lambda i: (0, 0)),    # b1
                pl.BlockSpec((Cmid, C), lambda i: (0, 0)),    # w2^T
                pl.BlockSpec((1, C), lambda i: (0, 0)),       # b2
            ],
            out_specs=pl.BlockSpec((B, C), lambda i: (0, 0)),
        ),
        compiler_params=pltpu.CompilerParams(
            dimension_semantics=("arbitrary",)),
        cost_estimate=pl.CostEstimate(
            flops=int(4 * B * C * Cmid),
            transcendentals=int(B * C),
            bytes_accessed=int((2 * B * C + 2 * C * Cmid + Cmid + C) * 4)),
    )(pooled_2d, w1t, b1_2d, w2t, b2_2d)

    s3 = s.reshape(B, C, 1)

    # ---- Pass 2: broadcast scale -------------------------------------------
    out = pl.pallas_call(
        _scale_kernel,
        out_shape=jax.ShapeDtypeStruct((B, C, HW), x.dtype),
        grid_spec=pltpu.PrefetchScalarGridSpec(
            num_scalar_prefetch=0,
            grid=(B, nt),
            in_specs=[
                pl.BlockSpec((1, C, T), lambda b, t: (b, 0, t)),
                pl.BlockSpec((1, C, 1), lambda b, t: (b, 0, 0)),
            ],
            out_specs=pl.BlockSpec((1, C, T), lambda b, t: (b, 0, t)),
        ),
        compiler_params=pltpu.CompilerParams(
            dimension_semantics=("parallel", "parallel")),
        cost_estimate=pl.CostEstimate(
            flops=int(B * C * HW),
            transcendentals=0,
            bytes_accessed=int(2 * B * C * HW * itemsize)),
    )(x_flat, s3)

    return out.reshape(B, C, H, W)


if __name__ == "__main__":
    B, C, H, W = 2, 4, 16, 16

    key = jax.random.PRNGKey(0)
    kx, kw1, kb1, kw2, kb2 = jax.random.split(key, 5)

    x = jax.random.normal(kx, (B, C, H, W), dtype=jnp.float32)
    # Conv2d(C, C, 1) weights are (C_out, C_in, 1, 1); keep the (C_out, C_in)
    # slice since the kernel size is 1x1.
    w1 = jax.random.normal(kw1, (C, C), dtype=jnp.float32) * 0.1
    b1 = jax.random.normal(kb1, (C,), dtype=jnp.float32) * 0.1
    w2 = jax.random.normal(kw2, (C, C), dtype=jnp.float32) * 0.1
    b2 = jax.random.normal(kb2, (C,), dtype=jnp.float32) * 0.1

    out = ca_layer(x, w1, b1, w2, b2)
    jax.block_until_ready(out)

    # Pure-JAX reference (same math, no Pallas).
    y_ref = jnp.mean(x, axis=(2, 3))                         # (B, C)
    h_ref = jnp.maximum(y_ref @ w1.T + b1, 0.0)
    s_ref = jax.nn.sigmoid(h_ref @ w2.T + b2)
    ref = x * s_ref[:, :, None, None]
    assert jnp.allclose(out, ref, atol=1e-5, rtol=1e-5), "mismatch vs reference"

    print("KERNEL_OK")
</pallas_src>

<mosaic_0001>
module attributes {stable_mosaic.version = 11 : i64} {
  func.func @_pool_sum_kernel(%arg0: i32, %arg1: i32, %arg2: memref<1x4x256xf32, #tpu.memory_space<vmem>>, %arg3: memref<1x4x1xf32, #tpu.memory_space<vmem>>) attributes {dimension_semantics = [#tpu.dimension_semantics<parallel>, #tpu.dimension_semantics<arbitrary>], iteration_bounds = array<i64: 2, 1>, scalar_prefetch = 0 : i64, scratch_operands = 0 : i64, tpu.core_type = #tpu.core_type<tc>, window_params = [{transform_indices = @transform_0, window_bounds = array<i64: 1, 4, 256>}, {transform_indices = @transform_1, window_bounds = array<i64: 1, 4, 1>}]} {
    %c0_i32 = arith.constant 0 : i32
    %0 = arith.cmpi eq, %arg1, %c0_i32 : i32
    %1 = arith.extui %0 : i1 to i32
    %c0_i32_0 = arith.constant 0 : i32
    %2 = arith.cmpi ne, %1, %c0_i32_0 : i32
    scf.if %2 {
      %cst_9 = arith.constant 0.000000e+00 : f32
      %13 = vector.broadcast %cst_9 : f32 to vector<1x4x1xf32>
      %c0_10 = arith.constant 0 : index
      %c0_11 = arith.constant 0 : index
      %c0_12 = arith.constant 0 : index
      %14 = vector.load %arg3[%c0_10, %c0_11, %c0_12] : memref<1x4x1xf32, #tpu.memory_space<vmem>>, vector<1x4x1xf32>
      tpu.vector_store %arg3[%c0_10, %c0_11, %c0_12], %13 {strides = array<i32>} : memref<1x4x1xf32, #tpu.memory_space<vmem>>, vector<1x4x1xf32>,
    } else {
    }
    %c0 = arith.constant 0 : index
    %c0_1 = arith.constant 0 : index
    %c0_2 = arith.constant 0 : index
    %3 = vector.load %arg2[%c0, %c0_1, %c0_2] : memref<1x4x256xf32, #tpu.memory_space<vmem>>, vector<1x4x256xf32>
    %4 = vector.shape_cast %3 : vector<1x4x256xf32> to vector<4x256xf32>
    %c0_3 = arith.constant 0 : index
    %c0_4 = arith.constant 0 : index
    %c0_5 = arith.constant 0 : index
    %5 = vector.load %arg3[%c0_3, %c0_4, %c0_5] : memref<1x4x1xf32, #tpu.memory_space<vmem>>, vector<1x4x1xf32>
    %6 = vector.shape_cast %5 : vector<1x4x1xf32> to vector<4x1xf32>
    %cst = arith.constant dense<0.000000e+00> : vector<4xf32>
    %7 = vector.multi_reduction <add>, %4, %cst [1] : vector<4x256xf32> to vector<4xf32>
    %8 = vector.shape_cast %7 : vector<4xf32> to vector<4x1xf32>
    %9 = arith.addf %6, %8 : vector<4x1xf32>
    %c0_6 = arith.constant 0 : index
    %c0_7 = arith.constant 0 : index
    %c0_8 = arith.constant 0 : index
    %10 = vector.load %arg3[%c0_6, %c0_7, %c0_8] : memref<1x4x1xf32, #tpu.memory_space<vmem>>, vector<1x4x1xf32>
    %11 = vector.shape_cast %10 : vector<1x4x1xf32> to vector<4x1xf32>
    %12 = vector.shape_cast %9 : vector<4x1xf32> to vector<1x4x1xf32>
    tpu.vector_store %arg3[%c0_6, %c0_7, %c0_8], %12 {strides = array<i32>} : memref<1x4x1xf32, #tpu.memory_space<vmem>>, vector<1x4x1xf32>,
    return
  }
  func.func @transform_0(%arg0: i32, %arg1: i32) -> (i32, i32, i32) {
    %c0_i32 = arith.constant 0 : i32
    %c0_i32_0 = arith.constant 0 : i32
    return %arg0, %c0_i32, %arg1 : i32, i32, i32
  }
  func.func @transform_1(%arg0: i32, %arg1: i32) -> (i32, i32, i32) {
    %c0_i32 = arith.constant 0 : i32
    %c0_i32_0 = arith.constant 0 : i32
    %c0_i32_1 = arith.constant 0 : i32
    return %arg0, %c0_i32, %c0_i32_0 : i32, i32, i32
  }
}

</mosaic_0001>

<bundles_post_ra>
// kernel: tpu_custom_call.1
= control target key start
LH: loop header
LB: loop body
LE: loop exit
PB: predicated region body
PF: predicated region fallthrough
CT: control target
= control target key end

     0   :  { %6 = vsyncpa [#allocation3], 0  ;;  %s535_s0 = inlined_call_operand.hbm [shape: f32[2,4,256], index: 0, kind: input, shape index: {}]   ;;  %s536_s1 = inlined_call_operand.vmem [shape: f32[2,4,1], index: 1, kind: output, shape index: {}]  }
   0x1   :  { %8 = vsyncpa [#allocation3 + $0x1], 0  ;;  %s410_s6 = smov 0   ;;  %s412_s7 = smov 0  }
   0x2   :  { %s414_s8 = smov 0   ;;  %s416_s9 = smov 0  }
   0x3   :  { %s418_s10 = smov 0   ;;  %s420_s11 = smov 0  }
   0x4 LB: > { %s246_s12 = sadd.s32 4294967295, %s396_s11   ;;  %s26_s13 = sadd.s32 1, %s392_s10  ;;  %s396_s11 = sphi %s420_s11, %s14_s11   ;;  %s392_s10 = sphi %s418_s10, %s546_s10   ;;  %s388_s9 = sphi %s416_s9, %s545_s9   ;;  %s384_s8 = sphi %s414_s8, %s544_s8   ;;  %s380_s7 = sphi %s412_s7, %s543_s7   ;;  %s376_s6 = sphi %s410_s6, %s542_s6  }
   0x5   : > { %p28_p0 = scmp.ge.s32.totalorder %s26_s13, 2  ;;  %s35_s14 = sadd.s32 1, %s384_s8 }
   0x6   : > { %p42_p1 = scmp.ne.s32.totalorder %s384_s8, %s380_s7  ;;  %p43_p2 = scmp.eq.s32.totalorder %s396_s11, 0 }
   0x7   : > { %s548_s13 = smov (%p28_p0, %s26_s13), 0  ;;  %p48_p4 = scmp.ne.s32.totalorder %s380_s7, %s376_s6 }
   0x8   : > { %p446_p3 = por %p43_p2, %p42_p1  ;;  %s30_s16 = ssub.s32 %s392_s10, %s548_s13 }
   0x9   : > { %p49_p5 = scmp.eq.s32.totalorder %s246_s12, 0  ;;  %p33_p6 = scmp.eq.s32.totalorder %s30_s16, 0 }
   0xa   : > { %p265_p8 = scmp.lt.s32.totalorder %s396_s11, 2  ;;  %s98_s19 = sand.u32 1, %s384_s8  }
   0xb   : > { %p453_p7 = por %p49_p5, %p48_p4  ;;  %s258_s20 = sshll.u32 %s392_s10, 7 }
   0xc   : > { %s459_s18 = scalar_select %p33_p6, %s384_s8, %s35_s14  }
   0xd   : > { %s250_s21 = sshll.u32 %s98_s19, 3  ;;  %s466_s24 = scalar_lea.hbm %s535_s0, %s258_s20 }
   0xe   : > { %s102_s25 = scalar_lea.vmem [#allocation2], %s250_s21  ;;  %p470_p9 = pnand %p265_p8, %p446_p3 }
   0xf   : > { %s112_s26 = sshll.u32 %s102_s25, 4  ;;  %s99_s28 = scalar_lea.sflag [#allocation3], %s98_s19  ;;  %s474_s26 = int_to_ptr.vmem [resolvable:$true] %s112_s26 }
  0x10   : > { %s316_s29 = scalar_lea.hbm %s466_s24, 128  ;;  %p318_p13 = pneg %p470_p9 }
  0x11   : > { %p317_p12 = scmp.ne.s32.totalorder %s466_s24, %s316_s29  ;;  %s321_s3 = scalar_lea.hbm %s535_s0, 256 }
  0x12   : > { %p322_p2 = scmp.lt.u32.totalorder %s466_s24, %s535_s0  ;;  %p323_p3 = scmp.lt.u32.totalorder %s321_s3, %s316_s29 }
  0x13   : > { %p319_p0 = pnand %p318_p13, %p317_p12  ;;  %p325_p5 = scmp.lt.u32.totalorder %s316_s29, %s466_s24 }
  0x14   : > { %p324_p4 = por %p323_p3, %p322_p2 }
  0x15   : > { %p320_p1 = pneg %p319_p0 }
  0x16   : > { %p326_p6 = por %p325_p5, %p324_p4 }
  0x18   : > { %p327_p8 = pnand %p326_p6, %p320_p1 }
  0x1a   : > { %330 = shalt.err (!%p327_p8)
}
  0x1b   : > { %s331_s6 = scalar_lea.vmem %s474_s26, 128  ;;  %s398_s12 = smov [#allocation2]  }
  0x1c   : > { %p332_p12 = scmp.ne.s32.totalorder %s474_s26, %s331_s6  ;;  %s336_s14 = sshll.u32 %s398_s12, 4  ;;  %s337_s14 = int_to_ptr.vmem [resolvable:$false] %s336_s14 }
  0x1d   : > { %s338_s15 = scalar_lea.vmem %s337_s14, 256  ;;  %p339_p11 = scmp.lt.s32.totalorder %s474_s26, %s337_s14 }
  0x1e   : > { %p334_p0 = pnand %p332_p12, %p318_p13  ;;  %p340_p2 = scmp.lt.s32.totalorder %s338_s15, %s331_s6 }
  0x20   : > { %p335_p10 = pneg %p334_p0  ;;  %p341_p3 = por %p340_p2, %p339_p11 }
  0x22   : > { %p342_p4 = pnand %p341_p3, %p335_p10 }
  0x24   : > { %345 = shalt.err (!%p342_p4)
}
  0x25   : > { %264 = dma.hbm_to_vmem [thread:$0]  (!%p470_p9), %s466_s24, 128, %s474_s26, %s99_s28  }
  0x26   : > { %p540_p1 = scmp.lt.s32.totalorder %s396_s11, 3  ;;  %p541_p5 = scmp.ge.s32.totalorder %s396_s11, 1 }
  0x28   : > { %p118_p13 = pnand %p541_p5, %p540_p1 }
  0x29   : > { %s123_s16 = sand.u32 (!%p118_p13), 1, %s380_s7  }
  0x2a   : > { %121 = sbr.rel (%p118_p13) target bundleno = 201 (0xc9), region = 24  ;;  %s254_s19 = sshll.u32 (!%p118_p13), %s123_s16, 3 }
  0x2b   : > { %s124_s20 = scalar_lea.sflag (!%p118_p13), [#allocation3], %s123_s16  ;;  %s127_s21 = scalar_lea.vmem (!%p118_p13), [#allocation2], %s254_s19 }
  0x31   : > { %371 = dma.done.wait (%p453_p7), %s124_s20, 128  }
  0x32   : > { %373 = vsyncadd (%p453_p7), %s124_s20, 4294967168  ;;  %p146_p10 = scmp.lt.s32.totalorder %s388_s9, 1  ;;  %vm154_vm0 = vcmask 3072   ;;  %vm161_vm1 = vcmask 1043456   ;;  %v399_v0 = vmov 0.0   ;;  %v156_v1 = vld [vmem:[%s127_s21] sm:$0xff] }
  0x33   : > { %v159_v2 = vcombine.high %v156_v1, %v156_v1  ;;  %v162_v3 = vsel %vm161_vm1, %v156_v1, 0.0 }
  0x34   : > { %s550_s9 = smov (!%p146_p10, %s388_s9), 1 }
  0x35   : > { %s255_s22 = sshll.u32 %s550_s9, 2  ;;  %v163_v4 = vsel %vm161_vm1, %v159_v2, 0.0 }
  0x36   : > { %s149_s25 = scalar_lea.vmem %s536_s1, %s255_s22  ;;  %v164_v5 = vadd.f32 %v163_v4, %v162_v3 }
  0x37   : > { %155 = vst.msk [vmem:[%s149_s25] sm:$0xf] %vm154_vm0, %v399_v0 }
  0x38   : > { %165 = vadd.xlane.f32.xlu0 %v164_v5 }
  0x3e   : > { %v157_v6 = vld [vmem:[%s149_s25] sm:$0xf] }
  0xc5   : > { %v166_v7 = vpop.xlane.xlu0 %165 }
  0xc6   : > { %v167_v8 = vadd.f32 %v166_v7, %v157_v6 }
  0xc8   : > { %169 = vst.msk [vmem:[%s149_s25] sm:$0xf] %vm154_vm0, %v167_v8 }
  0xc9 PF: > { %s14_s11 = sadd.s32 1, %s396_s11   ;;  %s542_s6 = smov %s380_s7 }
  0xca   : > { %p11_p7 = scmp.ge.s32.totalorder %s14_s11, 4   ;;  %s543_s7 = smov %s384_s8 }
  0xcb   : > { %s544_s8 = smov %s459_s18  ;;  %s545_s9 = smov %s392_s10 }
  0xcc   : > { %s546_s10 = smov %s548_s13  ;;  %13 = sbr.rel (!%p11_p7) target bundleno = 4 (0x4), region = 68 }
  0xd3   :  { %189 = vsyncpa [#allocation3], 1 }
  0xd4   :  { %191 = vsyncpa [#allocation3 + $0x1], 1 }

</bundles_post_ra>
